<compile_context>
chip_gen: v5e
topology: v5e:2x2
jax: 0.10.0
libtpu: 0.0.40
codegen_flags: <defaults>
</compile_context>

<pallas_src>
import jax
import jax.numpy as jnp
from jax import lax
from jax.experimental import pallas as pl
from jax.experimental.pallas import tpu as pltpu


def _round_up(x, m):
    return (x + m - 1) // m * m


def _cdiv(a, b):
    return (a + b - 1) // b


def _min_sublanes(dtype):
    return {4: 8, 2: 16, 1: 32}.get(jnp.dtype(dtype).itemsize, 8)


def _weight_tile_budget_bytes():
    """Per-generation weight-tile sizing: ~8 MiB on v7x (64 MiB VMEM/TC, 3.2 TB/s HBM),
    ~4 MiB on v5e/v6e (fits the scoped-VMEM defaults double-buffered, ~90%+ of the
    HBM roofline given the ~0.35 us per-grid-step overhead)."""
    try:
        if pltpu.get_tpu_info().vmem_capacity_bytes <= (64 << 20):
            return 8 << 20
    except Exception:
        pass
    return 4 << 20


def _make_kernel(*, B, M, K, B_pad, tn, tk, num_k, M_r, compute_dtype, lane_fold):
    """Build the kernel closed over static shape constants."""
    k_ragged = (num_k * tk) != K          # last K tile reads past the weight's K
    k_rem = K - (num_k - 1) * tk          # valid columns in that last K tile
    need_row_mask = (B_pad != B)
    need_col_mask = (M_r != M)

    def kernel(x_ref, w_ref, b_ref, tgt_ref, preds_ref, loss_ref, acc_ref):
        # x_ref:    (B_pad, tk)   flattened (zero-padded) inputs, K-tile k
        # w_ref:    (tn, tk)      weight tile, native nn.Linear (M, K) layout, unpadded HBM
        # b_ref:    (1, tn)       bias tile
        # tgt_ref:  (B_pad, tn)   flattened (zero-padded) targets, M-tile m
        # preds_ref:(B_pad, tn)   predictions tile (f32)
        # loss_ref: (1, B_pad, 128) or (1, B_pad, tn)  per-M-tile NLL partials
        # acc_ref:  (B_pad, tn) f32 VMEM accumulator (resident across K)
        k = pl.program_id(1)

        @pl.when(k == 0)
        def _init():
            acc_ref[...] = jnp.zeros_like(acc_ref)

        def accumulate(w_tile):
            # (B_pad, tk) . (tn, tk)^T -> (B_pad, tn); NT contraction maps to the
            # MXU transposed weight push (trans_b), f32 accumulation.
            acc_ref[...] += lax.dot_general(
                x_ref[...].astype(compute_dtype),
                w_tile.astype(compute_dtype),
                dimension_numbers=(((1,), (1,)), ((), ())),
                preferred_element_type=jnp.float32,
            )

        if not k_ragged:
            accumulate(w_ref[...])
        else:
            last_k = num_k - 1

            @pl.when(k != last_k)
            def _full_tile():
                accumulate(w_ref[...])

            @pl.when(k == last_k)
            def _ragged_tile():
                # Weight is not padded in HBM: out-of-bounds columns of this block
                # hold unspecified data -> zero them before the MXU so they cannot
                # contaminate (e.g. NaN) the K reduction.
                kcol = lax.broadcasted_iota(jnp.int32, (tn, tk), 1)
                accumulate(jnp.where(kcol < k_rem, w_ref[...], 0.0))

        @pl.when(k == pl.num_programs(1) - 1)
        def _epilogue():
            preds = acc_ref[...] + b_ref[...].astype(jnp.float32)
            preds_ref[...] = preds.astype(preds_ref.dtype)

            tgt = tgt_ref[...].astype(jnp.float32)
            # PoissonNLLLoss(log_input=True, full=False): exp(pred) - target * pred
            nll = jnp.exp(preds) - tgt * preds

            # Mask padded batch rows / padded (ragged) output columns out of the loss.
            mask = None
            if need_row_mask:
                mask = lax.broadcasted_iota(jnp.int32, (B_pad, tn), 0) < B
            if need_col_mask:
                col_ok = (lax.broadcasted_iota(jnp.int32, (B_pad, tn), 1)
                          + pl.program_id(0) * tn) < M
                mask = col_ok if mask is None else (mask & col_ok)
            if mask is not None:
                nll = jnp.where(mask, nll, 0.0)

            if lane_fold:
                # Fold the tn lanes into a lane-dense (B_pad, 128) partial.
                part = nll[:, 0:128]
                for g in range(1, tn // 128):
                    part = part + nll[:, g * 128:(g + 1) * 128]
                loss_ref[...] = part[None]
            else:
                # Single M tile with tn not a multiple of 128: emit the masked NLL
                # tile directly (still lane-dense: full last dim); wrapper sums it.
                loss_ref[...] = nll[None]

    return kernel


def baseline_encoder_forward(inputs, targets, weight, bias, *,
                             compute_dtype=jnp.bfloat16,
                             max_tk=2048,
                             weight_tile_bytes=None):
    """inputs: (B, T, C_in), targets: (B, T, C_out),
    weight: (T*C_out, T*C_in) in native torch nn.Linear layout (any float dtype;
    bf16 recommended — it halves the dominant HBM traffic), bias: (T*C_out,)."""
    B, T, C_in = inputs.shape
    _, _, C_out = targets.shape
    K = T * C_in
    M = T * C_out
    assert weight.shape == (M, K), f"expected weight {(M, K)}, got {weight.shape}"
    assert bias.shape == (M,), f"expected bias {(M,)}, got {bias.shape}"

    # --- batch padding: sublane minimum is set by the activation dtypes ---------
    min_sub = max(_min_sublanes(inputs.dtype), _min_sublanes(targets.dtype))
    B_pad = _round_up(max(B, 1), min_sub)

    # --- tile selection (weight streamed once, never padded/copied in HBM) ------
    w_item = jnp.dtype(weight.dtype).itemsize
    x_item = jnp.dtype(inputs.dtype).itemsize
    t_item = jnp.dtype(targets.dtype).itemsize
    if weight_tile_bytes is None:
        weight_tile_bytes = _weight_tile_budget_bytes()
    # K tile: the full K if it fits, else a 128-multiple (ragged last tile masked
    # in-kernel).  M tile: sized so the weight tile hits the per-gen byte budget.
    tk = K if K <= max_tk else max_tk
    tn_cap = max(128, min(4096, (weight_tile_bytes // (tk * w_item)) // 128 * 128))
    tn = M if M <= tn_cap else tn_cap
    num_k = _cdiv(K, tk)
    num_m = _cdiv(M, tn)          # >= 2 for large M -> v7x megacore split on axis 0
    K_r = num_k * tk
    M_r = num_m * tn
    lane_fold = (tn % 128 == 0)
    loss_lane = 128 if lane_fold else tn

    # --- pad only the small tensors (B*K, B*M, M elements; the weight is untouched)
    x_p = jnp.pad(inputs.reshape(B, K), ((0, B_pad - B), (0, K_r - K)))
    tgt_p = jnp.pad(targets.reshape(B, M), ((0, B_pad - B), (0, M_r - M)))
    b_p = jnp.pad(bias, (0, M_r - M)).reshape(1, M_r)

    # --- advisory cost estimate (per-array itemsizes) ----------------------------
    cost = pl.CostEstimate(
        flops=2 * B_pad * K_r * M_r,
        transcendentals=B_pad * M_r,
        bytes_accessed=(M * K * w_item                     # weight, streamed exactly once
                        + num_m * B_pad * K_r * x_item     # x re-read per M tile
                        + B_pad * M_r * t_item             # targets
                        + B_pad * M_r * 4                  # preds
                        + num_m * B_pad * loss_lane * 4),  # loss partials
    )

    # --- VMEM budget: double-buffered blocks + f32 accumulator (+ margin) --------
    vmem_bytes = (2 * tn * tk * w_item            # weight tiles (dominant)
                  + 2 * B_pad * tk * x_item
                  + 2 * B_pad * tn * t_item
                  + 2 * tn * jnp.dtype(bias.dtype).itemsize
                  + 2 * B_pad * tn * 4            # preds
                  + 2 * B_pad * loss_lane * 4     # loss partials
                  + B_pad * tn * 4)               # accumulator scratch
    vmem_limit = int(min(48 << 20, vmem_bytes + (8 << 20)))

    kernel = _make_kernel(B=B, M=M, K=K, B_pad=B_pad, tn=tn, tk=tk, num_k=num_k,
                          M_r=M_r, compute_dtype=compute_dtype, lane_fold=lane_fold)

    loss_shape = (num_m, B_pad, loss_lane)
    loss_block = (1, B_pad, loss_lane)

    preds_p, loss_parts = pl.pallas_call(
        kernel,
        out_shape=(
            jax.ShapeDtypeStruct((B_pad, M_r), jnp.float32),
            jax.ShapeDtypeStruct(loss_shape, jnp.float32),
        ),
        grid=(num_m, num_k),
        in_specs=[
            pl.BlockSpec((B_pad, tk), lambda m, k: (0, k)),    # x
            pl.BlockSpec((tn, tk), lambda m, k: (m, k)),       # weight (native (M,K))
            pl.BlockSpec((1, tn), lambda m, k: (0, m)),        # bias
            pl.BlockSpec((B_pad, tn), lambda m, k: (0, m)),    # targets
        ],
        out_specs=(
            pl.BlockSpec((B_pad, tn), lambda m, k: (0, m)),    # preds (lane-dense)
            pl.BlockSpec(loss_block, lambda m, k: (m, 0, 0)),  # loss partials
        ),
        scratch_shapes=[pltpu.VMEM((B_pad, tn), jnp.float32)],
        compiler_params=pltpu.CompilerParams(
            dimension_semantics=("parallel", "arbitrary"),
            vmem_limit_bytes=vmem_limit,
        ),
        cost_estimate=cost,
    )(x_p, weight, b_p, tgt_p)

    preds = preds_p[:B, :M].reshape(B, T, C_out)
    loss = jnp.sum(loss_parts) / B

    # EncoderOutput(loss, n_examples, preds, targets) as a dict
    return {
        "loss": loss,
        "n_examples": jnp.int32(B),
        "preds": preds,
        "targets": targets,
    }


if __name__ == "__main__":
    # Small shapes consistent with the module's forward.
    B = 2
    T = 8          # seq_len
    C_IN = 4       # in_channel
    C_OUT = 4      # out_channel

    key = jax.random.PRNGKey(0)
    k_in, k_tgt, k_w, k_b = jax.random.split(key, 4)

    inputs = jax.random.normal(k_in, (B, T, C_IN), dtype=jnp.float32)
    # targets are spike-count-like (non-negative), as used by Poisson NLL
    targets = jax.random.poisson(k_tgt, 1.0, (B, T, C_OUT)).astype(jnp.float32)

    fan_in = T * C_IN
    bound = 1.0 / (fan_in ** 0.5)
    weight_f32 = jax.random.uniform(k_w, (T * C_OUT, T * C_IN),
                                    minval=-bound, maxval=bound, dtype=jnp.float32)
    bias = jax.random.uniform(k_b, (T * C_OUT,),
                              minval=-bound, maxval=bound, dtype=jnp.float32)

    # Stream the weight as bf16 (per perf review): halves the dominant HBM traffic.
    weight = weight_f32.astype(jnp.bfloat16)

    out = baseline_encoder_forward(inputs, targets, weight, bias)
    jax.block_until_ready(out)

    # Pure-JAX reference computed from the same bf16-rounded operands, f32 math
    # (the kernel contracts bf16 x bf16 -> f32 on the MXU).
    x_bf = inputs.reshape(B, -1).astype(jnp.bfloat16).astype(jnp.float32)
    w_bf = weight.astype(jnp.float32)
    preds_ref = (jnp.dot(x_bf, w_bf.T, precision=lax.Precision.HIGHEST)
                 + bias).reshape(B, T, C_OUT)
    loss_ref = jnp.sum(jnp.exp(preds_ref) - targets * preds_ref) / B
    assert jnp.allclose(out["preds"], preds_ref, atol=2e-3, rtol=2e-3), "preds mismatch"
    assert jnp.allclose(out["loss"], loss_ref, atol=5e-3, rtol=5e-3), "loss mismatch"
    assert int(out["n_examples"]) == B

    print("KERNEL_OK")
</pallas_src>

<mosaic_0001>
module attributes {stable_mosaic.version = 11 : i64} {
  func.func @kernel(%arg0: i32, %arg1: i32, %arg2: memref<8x32xf32, #tpu.memory_space<vmem>>, %arg3: memref<32x32xbf16, #tpu.memory_space<vmem>>, %arg4: memref<1x32xf32, #tpu.memory_space<vmem>>, %arg5: memref<8x32xf32, #tpu.memory_space<vmem>>, %arg6: memref<8x32xf32, #tpu.memory_space<vmem>>, %arg7: memref<1x8x32xf32, #tpu.memory_space<vmem>>, %arg8: memref<8x32xf32, #tpu.memory_space<vmem>>) attributes {dimension_semantics = [#tpu.dimension_semantics<parallel>, #tpu.dimension_semantics<arbitrary>], iteration_bounds = array<i64: 1, 1>, scalar_prefetch = 0 : i64, scratch_operands = 1 : i64, tpu.core_type = #tpu.core_type<tc>, window_params = [{transform_indices = @transform_0, window_bounds = array<i64: 8, 32>}, {transform_indices = @transform_1, window_bounds = array<i64: 32, 32>}, {transform_indices = @transform_2, window_bounds = array<i64: 1, 32>}, {transform_indices = @transform_3, window_bounds = array<i64: 8, 32>}, {transform_indices = @transform_4, window_bounds = array<i64: 8, 32>}, {transform_indices = @transform_5, window_bounds = array<i64: 1, 8, 32>}]} {
    %c0_i32 = arith.constant 0 : i32
    %0 = arith.cmpi eq, %arg1, %c0_i32 : i32
    %1 = arith.extui %0 : i1 to i32
    %c0_i32_0 = arith.constant 0 : i32
    %2 = arith.cmpi ne, %1, %c0_i32_0 : i32
    scf.if %2 {
      %cst_10 = arith.constant 0.000000e+00 : f32
      %13 = vector.broadcast %cst_10 : f32 to vector<8x32xf32>
      %c0_11 = arith.constant 0 : index
      %c0_12 = arith.constant 0 : index
      %14 = vector.load %arg8[%c0_11, %c0_12] : memref<8x32xf32, #tpu.memory_space<vmem>>, vector<8x32xf32>
      tpu.vector_store %arg8[%c0_11, %c0_12], %13 {strides = array<i32>} : memref<8x32xf32, #tpu.memory_space<vmem>>, vector<8x32xf32>,
    } else {
    }
    %c0 = arith.constant 0 : index
    %c0_1 = arith.constant 0 : index
    %3 = vector.load %arg3[%c0, %c0_1] : memref<32x32xbf16, #tpu.memory_space<vmem>>, vector<32x32xbf16>
    %c0_2 = arith.constant 0 : index
    %c0_3 = arith.constant 0 : index
    %4 = vector.load %arg8[%c0_2, %c0_3] : memref<8x32xf32, #tpu.memory_space<vmem>>, vector<8x32xf32>
    %c0_4 = arith.constant 0 : index
    %c0_5 = arith.constant 0 : index
    %5 = vector.load %arg2[%c0_4, %c0_5] : memref<8x32xf32, #tpu.memory_space<vmem>>, vector<8x32xf32>
    %6 = arith.truncf %5 : vector<8x32xf32> to vector<8x32xbf16>
    %cst = arith.constant dense<0.000000e+00> : vector<8x32xf32>
    %7 = tpu.matmul %6, %3, %cst {dimension_numbers = #tpu.dot_dimension_numbers<[1], [1], [0], [0], [0, 0, 1, 0], [], []>} : vector<8x32xbf16>, vector<32x32xbf16>, vector<8x32xf32> -> vector<8x32xf32>
    %8 = arith.addf %4, %7 : vector<8x32xf32>
    %c0_6 = arith.constant 0 : index
    %c0_7 = arith.constant 0 : index
    %9 = vector.load %arg8[%c0_6, %c0_7] : memref<8x32xf32, #tpu.memory_space<vmem>>, vector<8x32xf32>
    tpu.vector_store %arg8[%c0_6, %c0_7], %8 {strides = array<i32>} : memref<8x32xf32, #tpu.memory_space<vmem>>, vector<8x32xf32>,
    %c0_i32_8 = arith.constant 0 : i32
    %10 = arith.cmpi eq, %arg1, %c0_i32_8 : i32
    %11 = arith.extui %10 : i1 to i32
    %c0_i32_9 = arith.constant 0 : i32
    %12 = arith.cmpi ne, %11, %c0_i32_9 : i32
    scf.if %12 {
      %c0_10 = arith.constant 0 : index
      %c0_11 = arith.constant 0 : index
      %13 = vector.load %arg8[%c0_10, %c0_11] : memref<8x32xf32, #tpu.memory_space<vmem>>, vector<8x32xf32>
      %c0_12 = arith.constant 0 : index
      %c0_13 = arith.constant 0 : index
      %14 = vector.load %arg4[%c0_12, %c0_13] : memref<1x32xf32, #tpu.memory_space<vmem>>, vector<1x32xf32>
      %15 = vector.broadcast %14 : vector<1x32xf32> to vector<8x32xf32>
      %16 = arith.addf %13, %15 : vector<8x32xf32>
      %c0_14 = arith.constant 0 : index
      %c0_15 = arith.constant 0 : index
      %17 = vector.load %arg6[%c0_14, %c0_15] : memref<8x32xf32, #tpu.memory_space<vmem>>, vector<8x32xf32>
      tpu.vector_store %arg6[%c0_14, %c0_15], %16 {strides = array<i32>} : memref<8x32xf32, #tpu.memory_space<vmem>>, vector<8x32xf32>,
      %c0_16 = arith.constant 0 : index
      %c0_17 = arith.constant 0 : index
      %18 = vector.load %arg5[%c0_16, %c0_17] : memref<8x32xf32, #tpu.memory_space<vmem>>, vector<8x32xf32>
      %19 = math.exp %16 : vector<8x32xf32>
      %20 = arith.mulf %18, %16 : vector<8x32xf32>
      %21 = arith.subf %19, %20 : vector<8x32xf32>
      %22 = tpu.iota {dimensions = array<i32: 0>} : vector<8x32xi32>
      %c2_i32 = arith.constant 2 : i32
      %23 = vector.broadcast %c2_i32 : i32 to vector<8x32xi32>
      %24 = arith.cmpi slt, %22, %23 : vector<8x32xi32>
      %cst_18 = arith.constant 0.000000e+00 : f32
      %25 = vector.broadcast %cst_18 : f32 to vector<8x32xf32>
      %26 = arith.select %24, %21, %25 : vector<8x32xi1>, vector<8x32xf32>
      %27 = vector.shape_cast %26 : vector<8x32xf32> to vector<1x8x32xf32>
      %c0_19 = arith.constant 0 : index
      %c0_20 = arith.constant 0 : index
      %c0_21 = arith.constant 0 : index
      %28 = vector.load %arg7[%c0_19, %c0_20, %c0_21] : memref<1x8x32xf32, #tpu.memory_space<vmem>>, vector<1x8x32xf32>
      tpu.vector_store %arg7[%c0_19, %c0_20, %c0_21], %27 {strides = array<i32>} : memref<1x8x32xf32, #tpu.memory_space<vmem>>, vector<1x8x32xf32>,
    } else {
    }
    return
  }
  func.func @transform_0(%arg0: i32, %arg1: i32) -> (i32, i32) {
    %c0_i32 = arith.constant 0 : i32
    %c0_i32_0 = arith.constant 0 : i32
    return %c0_i32, %arg1 : i32, i32
  }
  func.func @transform_1(%arg0: i32, %arg1: i32) -> (i32, i32) {
    %c0_i32 = arith.constant 0 : i32
    return %arg0, %arg1 : i32, i32
  }
  func.func @transform_2(%arg0: i32, %arg1: i32) -> (i32, i32) {
    %c0_i32 = arith.constant 0 : i32
    %c0_i32_0 = arith.constant 0 : i32
    return %c0_i32, %arg0 : i32, i32
  }
  func.func @transform_3(%arg0: i32, %arg1: i32) -> (i32, i32) {
    %c0_i32 = arith.constant 0 : i32
    %c0_i32_0 = arith.constant 0 : i32
    return %c0_i32, %arg0 : i32, i32
  }
  func.func @transform_4(%arg0: i32, %arg1: i32) -> (i32, i32) {
    %c0_i32 = arith.constant 0 : i32
    %c0_i32_0 = arith.constant 0 : i32
    return %c0_i32, %arg0 : i32, i32
  }
  func.func @transform_5(%arg0: i32, %arg1: i32) -> (i32, i32, i32) {
    %c0_i32 = arith.constant 0 : i32
    %c0_i32_0 = arith.constant 0 : i32
    %c0_i32_1 = arith.constant 0 : i32
    return %arg0, %c0_i32, %c0_i32_0 : i32, i32, i32
  }
}

</mosaic_0001>

<bundles_post_ra>
// kernel: tpu_custom_call.1
= control target key start
LH: loop header
LB: loop body
LE: loop exit
PB: predicated region body
PF: predicated region fallthrough
CT: control target
= control target key end

     0   :  { %11 = vsyncpa [#allocation4], 0  ;;  %s380_s0 = inlined_call_operand.hbm [shape: f32[8,32], index: 0, kind: input, shape index: {}]   ;;  %s381_s1 = inlined_call_operand.hbm [shape: bf16[32,32], index: 1, kind: input, shape index: {}]   ;;  %s382_s2 = inlined_call_operand.vmem [shape: f32[1,32], index: 2, kind: input, shape index: {}]   ;;  %s383_s3 = inlined_call_operand.hbm [shape: f32[8,32], index: 3, kind: input, shape index: {}]   ;;  %s384_s4 = inlined_call_operand.hbm [shape: f32[8,32], index: 4, kind: output, shape index: {0}]   ;;  %s385_s5 = inlined_call_operand.hbm [shape: f32[1,8,32], index: 5, kind: output, shape index: {1}]  }
   0x1   :  { %12 = vsyncpa [#allocation7], 0 }
   0x2   :  { %13 = vsyncpa [#allocation5], 0  ;;  %s30_s20 = sshll.u32 %s381_s1, 4  ;;  %s31_s20 = int_to_ptr.hbm [resolvable:$true] %s30_s20 }
   0x3   :  { %14 = vsyncpa [#allocation11], 0  ;;  %s317_s21 = smov [#allocation6]   ;;  %s20_s25 = sshll.u32 %s380_s0, 4  ;;  %s21_s25 = int_to_ptr.hbm [resolvable:$true] %s20_s25 }
   0x4   :  { %s32_s22 = sshll.u32 %s317_s21, 4  ;;  %s318_s26 = smov 64   ;;  %s33_s22 = int_to_ptr.vmem [resolvable:$true] %s32_s22 }
   0x5   :  { %s319_s27 = smov 4   ;;  %s320_s28 = smov [#allocation3]  }
   0x6   :  { %38 = dma.hbm_to_vmem [thread:$0]  %s31_s20, 256, %s33_s22, [#allocation7], %s318_s26, %s318_s26, %s319_s27  }
   0x7   :  { %s22_s29 = sshll.u32 %s320_s28, 4  ;;  %s46_s7 = sshll.u32 %s383_s3, 4  ;;  %s23_s29 = int_to_ptr.vmem [resolvable:$true] %s22_s29  ;;  %s47_s7 = int_to_ptr.hbm [resolvable:$true] %s46_s7 }
   0x8   :  { %25 = dma.hbm_to_vmem [thread:$0]  %s21_s25, 128, %s23_s29, [#allocation4]  }
   0x9   :  { %s321_s1 = smov [#allocation8]  }
   0xa   :  { %s48_s8 = sshll.u32 %s321_s1, 4  ;;  %s49_s8 = int_to_ptr.vmem [resolvable:$true] %s48_s8 }
   0xb   :  { %51 = dma.hbm_to_vmem [thread:$0]  %s47_s7, 128, %s49_s8, [#allocation7]  }
   0xc   :  { %309 = dma.done.wait [#allocation4], 128  }
   0xd   :  { %310 = vsyncadd [#allocation4], 4294967168 }
   0xe   :  { %311 = dma.done.wait [#allocation7], 384  }
   0xf   :  { %312 = vsyncadd [#allocation7], 4294966912  ;;  %vm69_vm0 = vcmask 261120   ;;  %v322_v0 = vmov 0.0   ;;  %v177_v1 = vld [vmem:[#allocation6 + $0x8] sm:$0xff]  ;;  %v176_v3 = vld [vmem:[#allocation6] sm:$0xff]  ;;  %v128_v15 = vlaneseq }
  0x10   :  { %70 = vst.msk [vmem:[#allocation2] sm:$0xff] %vm69_vm0, %v322_v0  ;;  %v96_v2 = vsel %vm69_vm0, %v177_v1, 0  ;;  %v93_v4 = vsel %vm69_vm0, %v176_v3, 0  ;;  %v76_v5 = vld [vmem:[#allocation3] sm:$0xff]  ;;  %v186_v10 = vld [vmem:[%s382_s2] ss:$0 sm:$0xff] }
  0x11   :  { %104 = vmatpush.bf16.xpose.msra.mxu0 %v96_v2  ;;  %v77_v6 = vpack.c.bf16 %v76_v5, %v76_v5  ;;  %s323_s9 = smov [#allocation9]   ;;  %s140_s13 = sshll.u32 %s384_s4, 4  ;;  %v123_v16 = vld [vmem:[#allocation8] sm:$0xff]  ;;  %v129_v17 = vshrl.u32 %v128_v15, 7  ;;  %s141_s13 = int_to_ptr.hbm [resolvable:$true] %s140_s13 }
  0x12   :  { %s138_s10 = sshll.u32 %s323_s9, 4  ;;  %s324_s2 = smov [#allocation10]   ;;  %s139_s10 = int_to_ptr.vmem [resolvable:$true] %s138_s10 }
  0x13   :  { %s149_s14 = sshll.u32 %s324_s2, 4  ;;  %s151_s17 = sshll.u32 %s385_s5, 4  ;;  %vm130_vm1 = vcmp.lt.s32.totalorder %v129_v17, 2  ;;  %s150_s14 = int_to_ptr.vmem [resolvable:$true] %s149_s14  ;;  %s152_s17 = int_to_ptr.hbm [resolvable:$true] %s151_s17 }
  0x17   :  { %v75_v7 = vld [vmem:[#allocation2] sm:$0xff] }
  0x19   :  { %105 = vmatpush.bf16.xpose.msra.mxu0 %v93_v4 }
  0x20   :  { %175 = vmatmul.msk.bf16.vlgmr.msra.gmra.mxu0 %vm69_vm0, %v77_v6 }
  0x9d   :  { %v107_v8 = vpop.f32.mrf.mxu0 }
  0x9e   :  { %v111_v9 = vadd.f32 %v107_v8, %v75_v7 }
  0xa0   :  { %112 = vst.msk [vmem:[#allocation2] sm:$0xff] %vm69_vm0, %v111_v9 }
  0xa5   :  { %v109_v11 = vpop.f32.mrf.mxu0 }
  0xa7   :  { %v116_v12 = vld [vmem:[#allocation2] sm:$0xff] }
  0xa8   :  { %v121_v13 = vadd.f32 %v186_v10, %v116_v12 }
  0xaa   :  { %122 = vst.msk [vmem:[#allocation9] sm:$0xff] %vm69_vm0, %v121_v13  ;;  %v124_v14 = vmul.f32 1.442695, %v121_v13  ;;  %v126_v18 = vmul.f32 %v123_v16, %v121_v13 }
  0xab   :  { %143 = dma.vmem_to_hbm [thread:$0]  %s139_s10, 128, %s141_s13, [#allocation5]  }
  0xac   :  { %187 = vpow2.f32 %v124_v14 }
  0xb2   :  { %v188_v19 = vpop.eup %187 }
  0xb3   :  { %v127_v20 = vsub.f32 %v188_v19, %v126_v18 }
  0xb5   :  { %v131_v21 = vsel %vm130_vm1, %v127_v20, 0.0 }
  0xb6   :  { %132 = vst.msk [vmem:[#allocation10] sm:$0xff] %vm69_vm0, %v131_v21 }
  0xb7   :  { %154 = dma.vmem_to_hbm [thread:$0]  %s150_s14, 128, %s152_s17, [#allocation11]  }
  0xb8   :  { %313 = dma.done.wait [#allocation5], 128  }
  0xb9   :  { %314 = vsyncadd [#allocation5], 4294967168 }
  0xba   :  { %315 = dma.done.wait [#allocation11], 128  }
  0xbb   :  { %316 = vsyncadd [#allocation11], 4294967168 }
  0xbc   :  { %163 = vsyncpa [#allocation4], 1 }
  0xbd   :  { %164 = vsyncpa [#allocation7], 1 }
  0xbe   :  { %165 = vsyncpa [#allocation5], 1 }
  0xbf   :  { %166 = vsyncpa [#allocation11], 1 }

</bundles_post_ra>
